<compile_context>
chip_gen: v7x
topology: tpu7x:2x2x1
jax: 0.10.0
libtpu: 0.0.40
codegen_flags: <defaults>
</compile_context>

<pallas_src>
import functools

import jax
import jax.numpy as jnp
from jax.experimental import pallas as pl
from jax.experimental.pallas import tpu as pltpu


# ---------------------------------------------------------------------------
# Small helpers
# ---------------------------------------------------------------------------

def _round_up(x, m):
    return ((x + m - 1) // m) * m


def _vmem_limit(block_bytes, margin=4 << 20, cap=48 << 20):
    """Rough scoped-VMEM limit: double-buffered blocks + slack, capped for v7x."""
    return int(max(min(2 * block_bytes + margin, cap), 1 << 20))


def _agg_tiles(N):
    """(Np, td, ts): padded node count, dst tile, src tile for the (N,N) adjacency."""
    if N <= 1024:
        Np = _round_up(N, 8)
        return Np, Np, Np                       # single-tile pair, full extent
    Np = _round_up(N, 512)

    def pick(candidates):
        for c in candidates:
            if Np % c == 0:
                return c
        return 512

    td = pick((1024, 512))                      # parallel dst axis
    ts = pick((2048, 1536, 1024, 512))          # innermost reduction axis
    return Np, td, ts


# ---------------------------------------------------------------------------
# Kernel 1: fold symmetric normalization into the adjacency (tiled, done once)
#   norm_adj = D_in^{-1/2} * A * D_out^{-1/2}   (degrees clamped to >= 1)
# ---------------------------------------------------------------------------

def _scale_adj_kernel(adj_ref, ndst_ref, nsrc_ref, o_ref):
    o_ref[...] = (ndst_ref[...] * adj_ref[...] * nsrc_ref[...]).astype(o_ref.dtype)


def normalize_adj(adj_p):
    """adj_p: zero-padded (Np, Np) f32 -> bf16 D_in^-1/2 A D_out^-1/2."""
    Np = adj_p.shape[0]
    # Degree reductions are a single cheap streaming pass; let XLA handle them.
    in_deg = jnp.sum(adj_p, axis=1, keepdims=True)          # (Np, 1) dst in-degree
    out_deg = jnp.sum(adj_p, axis=0, keepdims=True)         # (1, Np) src out-degree
    ndst = jax.lax.rsqrt(jnp.maximum(in_deg, 1.0))
    nsrc = jax.lax.rsqrt(jnp.maximum(out_deg, 1.0))

    t = 512 if (Np > 512 and Np % 512 == 0) else Np
    grid = (Np // t, Np // t)
    blk_bytes = t * t * 4 + t * t * 2 + t * 4 + t * 4
    return pl.pallas_call(
        _scale_adj_kernel,
        out_shape=jax.ShapeDtypeStruct((Np, Np), jnp.bfloat16),
        grid=grid,
        in_specs=[pl.BlockSpec((t, t), lambda i, j: (i, j)),
                  pl.BlockSpec((t, 1), lambda i, j: (i, 0)),
                  pl.BlockSpec((1, t), lambda i, j: (0, j))],
        out_specs=pl.BlockSpec((t, t), lambda i, j: (i, j)),
        compiler_params=pltpu.CompilerParams(
            dimension_semantics=("parallel", "parallel"),
            vmem_limit_bytes=_vmem_limit(blk_bytes)),
    )(adj_p, ndst, nsrc)


# ---------------------------------------------------------------------------
# Kernel 2: tiled Linear + f32-bias epilogue (per-node-type input projections)
# ---------------------------------------------------------------------------

def _linear_bias_kernel(x_ref, w_ref, b_ref, o_ref):
    acc = jnp.dot(x_ref[...], w_ref[...], preferred_element_type=jnp.float32)
    o_ref[...] = (acc + b_ref[...]).astype(o_ref.dtype)


def linear_bias(x, w, b, out_dtype=jnp.bfloat16, tm_cap=512):
    """x: [M, K] @ w: [K, D] + b -> [M, D], tiled over rows ("parallel")."""
    M, K = x.shape
    D = int(w.shape[1])
    tm = min(tm_cap, _round_up(M, 8))
    Mp = _round_up(M, tm)
    if Mp != M:
        x = jnp.pad(x, ((0, Mp - M), (0, 0)))
    blk_bytes = tm * K * 2 + K * D * 2 + D * 4 + tm * D * 2
    out = pl.pallas_call(
        _linear_bias_kernel,
        out_shape=jax.ShapeDtypeStruct((Mp, D), out_dtype),
        grid=(Mp // tm,),
        in_specs=[pl.BlockSpec((tm, K), lambda i: (i, 0)),
                  pl.BlockSpec((K, D), lambda i: (0, 0)),
                  pl.BlockSpec((1, D), lambda i: (0, 0))],
        out_specs=pl.BlockSpec((tm, D), lambda i: (i, 0)),
        compiler_params=pltpu.CompilerParams(
            dimension_semantics=("parallel",),
            vmem_limit_bytes=_vmem_limit(blk_bytes)),
    )(x.astype(jnp.bfloat16), w.astype(jnp.bfloat16),
      b.reshape(1, D).astype(jnp.float32))
    return out[:M]


# ---------------------------------------------------------------------------
# Kernel 3: fused GraphConv layer, aggregate-first
#   acc  = sum_j  adj[i, j] @ h[j]                (f32 VMEM accumulator)
#   out  = activation( acc [@ W] + b )            (epilogue, once per dst tile)
# grid = (dst_tiles [parallel], src_tiles [arbitrary, innermost]).
# ---------------------------------------------------------------------------

def _agg_kernel(adj_ref, h_ref, b_ref, o_ref, acc_ref, *, activation):
    j = pl.program_id(1)

    @pl.when(j == 0)
    def _():
        acc_ref[...] = jnp.zeros_like(acc_ref)

    acc_ref[...] += jnp.dot(adj_ref[...], h_ref[...],
                            preferred_element_type=jnp.float32)

    @pl.when(j == pl.num_programs(1) - 1)
    def _():
        out = acc_ref[...] + b_ref[...]
        if activation is not None:
            out = activation(out)
        o_ref[...] = out.astype(o_ref.dtype)


def _agg_proj_kernel(adj_ref, h_ref, w_ref, b_ref, o_ref, acc_ref, *, activation):
    j = pl.program_id(1)

    @pl.when(j == 0)
    def _():
        acc_ref[...] = jnp.zeros_like(acc_ref)

    acc_ref[...] += jnp.dot(adj_ref[...], h_ref[...],
                            preferred_element_type=jnp.float32)

    @pl.when(j == pl.num_programs(1) - 1)
    def _():
        # Aggregate-first: project the (td, H) accumulator once per dst tile.
        out = jnp.dot(acc_ref[...].astype(jnp.bfloat16), w_ref[...],
                      preferred_element_type=jnp.float32) + b_ref[...]
        if activation is not None:
            out = activation(out)
        o_ref[...] = out.astype(o_ref.dtype)


def gcn_layer(norm_adj, h, w, b, activation, out_dtype, td, ts):
    """out = activation( (norm_adj @ h) [@ w] + b ).  w is None for weight=False."""
    Np, H = h.shape
    d_out = int(b.shape[0])
    grid = (Np // td, Np // ts)

    out_bytes = 4 if out_dtype == jnp.float32 else 2
    blk_bytes = (td * ts * 2 + ts * H * 2 + H * d_out * 2 + d_out * 4
                 + td * d_out * out_bytes + td * H * 4)
    cparams = pltpu.CompilerParams(
        dimension_semantics=("parallel", "arbitrary"),
        vmem_limit_bytes=_vmem_limit(blk_bytes))

    adj_spec = pl.BlockSpec((td, ts), lambda i, j: (i, j))
    h_spec = pl.BlockSpec((ts, H), lambda i, j: (j, 0))
    b_spec = pl.BlockSpec((1, d_out), lambda i, j: (0, 0))
    out_spec = pl.BlockSpec((td, d_out), lambda i, j: (i, 0))
    out_shape = jax.ShapeDtypeStruct((Np, d_out), out_dtype)
    scratch = [pltpu.VMEM((td, H), jnp.float32)]
    b2 = b.reshape(1, d_out).astype(jnp.float32)

    if w is None:                               # GraphConv(weight=False)
        return pl.pallas_call(
            functools.partial(_agg_kernel, activation=activation),
            out_shape=out_shape, grid=grid,
            in_specs=[adj_spec, h_spec, b_spec],
            out_specs=out_spec, scratch_shapes=scratch, compiler_params=cparams,
        )(norm_adj, h, b2)

    w_spec = pl.BlockSpec((H, d_out), lambda i, j: (0, 0))
    return pl.pallas_call(
        functools.partial(_agg_proj_kernel, activation=activation),
        out_shape=out_shape, grid=grid,
        in_specs=[adj_spec, h_spec, w_spec, b_spec],
        out_specs=out_spec, scratch_shapes=scratch, compiler_params=cparams,
    )(norm_adj, h, w.astype(jnp.bfloat16), b2)


# ---------------------------------------------------------------------------
# Parameter init (deterministic, synthetic) and full GCN forward
# ---------------------------------------------------------------------------

def _xavier(key, shape, gain=1.414):
    fan_in, fan_out = shape
    std = gain * (2.0 / (fan_in + fan_out)) ** 0.5
    return std * jax.random.normal(key, shape, dtype=jnp.float32)


def init_gcn_params(key, in_dims, num_hidden, num_classes, num_layers):
    keys = jax.random.split(key, len(in_dims) + num_layers + 2)
    fc_list = []
    for i, in_dim in enumerate(in_dims):
        kw, kb = jax.random.split(keys[i])
        fc_list.append({
            "w": _xavier(kw, (in_dim, num_hidden)),
            "b": 0.01 * jax.random.normal(kb, (num_hidden,), dtype=jnp.float32),
        })
    layers = [{"b": jnp.zeros((num_hidden,), jnp.float32)}]          # weight=False layer
    for l in range(num_layers - 1):
        layers.append({
            "w": _xavier(keys[len(in_dims) + l], (num_hidden, num_hidden), gain=1.0),
            "b": jnp.zeros((num_hidden,), jnp.float32),
        })
    layers.append({
        "w": _xavier(keys[len(in_dims) + num_layers - 1],
                     (num_hidden, num_classes), gain=1.0),
        "b": jnp.zeros((num_classes,), jnp.float32),
    })
    return {"fc_list": fc_list, "layers": layers}


def gcn_forward(adj, features_list, params, *, activation=jax.nn.elu):
    N = adj.shape[0]
    Np, td, ts = _agg_tiles(N)

    # Per-node-type input projections (Linear + f32 bias), one small matmul each.
    h = jnp.concatenate(
        [linear_bias(x, p["w"], p["b"])
         for x, p in zip(features_list, params["fc_list"])], axis=0)   # [N, H] bf16

    # Zero-pad nodes up to the tile grid (zero adjacency rows/cols contribute
    # nothing; degree clamp keeps the rsqrt finite); slice off at the end.
    if Np != N:
        h = jnp.pad(h, ((0, Np - N), (0, 0)))
        adj = jnp.pad(adj, ((0, Np - N), (0, Np - N)))

    # Symmetric normalization folded into the adjacency once, shared by layers.
    norm_adj = normalize_adj(adj.astype(jnp.float32))                  # [Np, Np] bf16
    # TODO(synk): store norm_adj in int8 (v5e/v6e) / fp8 (v7x) with a scale in
    # the epilogue to halve the dominant HBM stream; kept bf16 for portability.

    # Dropout is identity at inference (eval mode).
    layers = params["layers"]
    h = gcn_layer(norm_adj, h, None, layers[0]["b"], activation,
                  jnp.bfloat16, td, ts)                                # weight=False
    for lp in layers[1:-1]:
        h = gcn_layer(norm_adj, h, lp["w"], lp["b"], activation,
                      jnp.bfloat16, td, ts)                            # hidden layers
    logits = gcn_layer(norm_adj, h, layers[-1]["w"], layers[-1]["b"], None,
                       jnp.float32, td, ts)                            # classifier
    return logits[:N]


# ---------------------------------------------------------------------------

if __name__ == "__main__":
    key = jax.random.PRNGKey(0)
    k_f0, k_f1, k_adj, k_params = jax.random.split(key, 4)

    in_dims = [12, 8]            # two node types with different input dims
    n_per_type = [16, 16]
    num_hidden = 64
    num_classes = 4
    num_layers = 2               # -> GraphConv stack of num_layers + 1 layers

    features_list = [
        jax.random.normal(k_f0, (n_per_type[0], in_dims[0]), dtype=jnp.float32),
        jax.random.normal(k_f1, (n_per_type[1], in_dims[1]), dtype=jnp.float32),
    ]
    N = sum(n_per_type)

    # Random directed graph + self-loops (adj[v, u] = 1 iff edge u -> v).
    adj = (jax.random.uniform(k_adj, (N, N)) < 0.25).astype(jnp.float32)
    adj = jnp.maximum(adj, jnp.eye(N, dtype=jnp.float32))

    params = init_gcn_params(k_params, in_dims, num_hidden, num_classes, num_layers)

    logits = gcn_forward(adj, features_list, params, activation=jax.nn.elu)
    logits = jax.block_until_ready(logits)
    assert logits.shape == (N, num_classes)
    assert bool(jnp.all(jnp.isfinite(logits)))
    print("KERNEL_OK")
</pallas_src>

<mosaic_0001>
module attributes {stable_mosaic.version = 11 : i64} {
  func.func @_linear_bias_kernel(%arg0: i32, %arg1: memref<16x12xbf16, #tpu.memory_space<vmem>>, %arg2: memref<12x64xbf16, #tpu.memory_space<vmem>>, %arg3: memref<1x64xf32, #tpu.memory_space<vmem>>, %arg4: memref<16x64xbf16, #tpu.memory_space<vmem>>) attributes {dimension_semantics = [#tpu.dimension_semantics<parallel>], iteration_bounds = array<i64: 1>, scalar_prefetch = 0 : i64, scratch_operands = 0 : i64, tpu.core_type = #tpu.core_type<tc>, window_params = [{transform_indices = @transform_0, window_bounds = array<i64: 16, 12>}, {pipeline_mode = #tpu.pipeline_mode<synchronous>, transform_indices = @transform_1, window_bounds = array<i64: 12, 64>}, {pipeline_mode = #tpu.pipeline_mode<synchronous>, transform_indices = @transform_2, window_bounds = array<i64: 1, 64>}, {transform_indices = @transform_3, window_bounds = array<i64: 16, 64>}]} {
    %c0 = arith.constant 0 : index
    %c0_0 = arith.constant 0 : index
    %0 = vector.load %arg1[%c0, %c0_0] : memref<16x12xbf16, #tpu.memory_space<vmem>>, vector<16x12xbf16>
    %c0_1 = arith.constant 0 : index
    %c0_2 = arith.constant 0 : index
    %1 = vector.load %arg2[%c0_1, %c0_2] : memref<12x64xbf16, #tpu.memory_space<vmem>>, vector<12x64xbf16>
    %cst = arith.constant dense<0.000000e+00> : vector<16x64xf32>
    %2 = tpu.matmul %0, %1, %cst {dimension_numbers = #tpu.dot_dimension_numbers<[1], [0], [0], [1], [0, 0, 1, 1], [], []>} : vector<16x12xbf16>, vector<12x64xbf16>, vector<16x64xf32> -> vector<16x64xf32>
    %c0_3 = arith.constant 0 : index
    %c0_4 = arith.constant 0 : index
    %3 = vector.load %arg3[%c0_3, %c0_4] : memref<1x64xf32, #tpu.memory_space<vmem>>, vector<1x64xf32>
    %4 = vector.broadcast %3 : vector<1x64xf32> to vector<16x64xf32>
    %5 = arith.addf %2, %4 : vector<16x64xf32>
    %6 = arith.truncf %5 : vector<16x64xf32> to vector<16x64xbf16>
    %c0_5 = arith.constant 0 : index
    %c0_6 = arith.constant 0 : index
    %7 = vector.load %arg4[%c0_5, %c0_6] : memref<16x64xbf16, #tpu.memory_space<vmem>>, vector<16x64xbf16>
    tpu.vector_store %arg4[%c0_5, %c0_6], %6 {strides = array<i32>} : memref<16x64xbf16, #tpu.memory_space<vmem>>, vector<16x64xbf16>,
    return
  }
  func.func @transform_0(%arg0: i32) -> (i32, i32) {
    %c0_i32 = arith.constant 0 : i32
    %c0_i32_0 = arith.constant 0 : i32
    return %arg0, %c0_i32 : i32, i32
  }
  func.func @transform_1(%arg0: i32) -> (i32, i32) {
    %c0_i32 = arith.constant 0 : i32
    %c0_i32_0 = arith.constant 0 : i32
    %c0_i32_1 = arith.constant 0 : i32
    return %c0_i32, %c0_i32_0 : i32, i32
  }
  func.func @transform_2(%arg0: i32) -> (i32, i32) {
    %c0_i32 = arith.constant 0 : i32
    %c0_i32_0 = arith.constant 0 : i32
    %c0_i32_1 = arith.constant 0 : i32
    return %c0_i32, %c0_i32_0 : i32, i32
  }
  func.func @transform_3(%arg0: i32) -> (i32, i32) {
    %c0_i32 = arith.constant 0 : i32
    %c0_i32_0 = arith.constant 0 : i32
    return %arg0, %c0_i32 : i32, i32
  }
}

</mosaic_0001>

<bundles_post_ra>
// kernel: tpu_custom_call.1
= control target key start
LH: loop header
LB: loop body
LE: loop exit
PB: predicated region body
PF: predicated region fallthrough
CT: control target
= control target key end

     0   :  { %8 = vsyncpa [#allocation3], 0  ;;  %s315_s0 = inlined_call_operand.hbm [shape: bf16[16,12], index: 0, kind: input, shape index: {}]   ;;  %s316_s1 = inlined_call_operand.hbm [shape: bf16[12,64], index: 1, kind: input, shape index: {}]   ;;  %s317_s2 = inlined_call_operand.vmem [shape: f32[1,64], index: 2, kind: input, shape index: {}]   ;;  %s318_s3 = inlined_call_operand.hbm [shape: bf16[16,64], index: 3, kind: output, shape index: {}]  }
   0x1   :  { %9 = vsyncpa [#allocation6], 0 }
   0x2   :  { %10 = vsyncpa [#allocation4], 0  ;;  %s240_s12 = smov [#allocation2]   ;;  %s168_s16 = scalar_lea.hbm %s315_s0, 128 }
   0x3   :  { %s16_s13 = sshll.u32 %s240_s12, 4  ;;  %p169_p0 = scmp.ne.s32.totalorder %s315_s0, %s168_s16  ;;  %s17_s13 = int_to_ptr.vmem [resolvable:$true] %s16_s13 }
   0x4   :  { %p172_p1 = scmp.lt.u32.totalorder %s168_s16, %s315_s0 }
   0x6   :  { %p174_p2 = pnand %p172_p1, %p169_p0 }
   0x8   :  { %177 = shalt.err (!%p174_p2)
}
   0x9   :  { %s178_s21 = scalar_lea.vmem %s17_s13, 128  ;;  %p183_p4 = scmp.lt.s32.totalorder %s17_s13, %s17_s13 }
   0xa   :  { %p179_p3 = scmp.ne.s32.totalorder %s17_s13, %s178_s21  ;;  %p184_p5 = scmp.lt.s32.totalorder %s178_s21, %s178_s21 }
   0xc   :  { %p185_p6 = por %p184_p5, %p183_p4 }
   0xe   :  { %p186_p7 = pnand %p185_p6, %p179_p3 }
  0x10   :  { %189 = shalt.err (!%p186_p7)
}
  0x11   :  { %s241_s22 = smov 64   ;;  %s242_s23 = smov 4  }
  0x12   :  { %22 = dma.hbm_to_vmem [thread:$0]  %s315_s0, 128, %s17_s13, [#allocation3], %s241_s22, %s241_s22, %s242_s23  }
  0x13   :  { %s243_s26 = smov [#allocation5]   ;;  %s190_s30 = scalar_lea.hbm %s316_s1, 128 }
  0x14   :  { %s28_s27 = sshll.u32 %s243_s26, 4  ;;  %p191_p8 = scmp.ne.s32.totalorder %s316_s1, %s190_s30  ;;  %s29_s27 = int_to_ptr.vmem [resolvable:$true] %s28_s27 }
  0x15   :  { %p194_p9 = scmp.lt.u32.totalorder %s190_s30, %s316_s1 }
  0x17   :  { %p196_p10 = pnand %p194_p9, %p191_p8 }
  0x19   :  { %199 = shalt.err (!%p196_p10)
}
  0x1a   :  { %s200_s8 = scalar_lea.vmem %s29_s27, 128  ;;  %p205_p12 = scmp.lt.s32.totalorder %s29_s27, %s29_s27 }
  0x1b   :  { %p201_p11 = scmp.ne.s32.totalorder %s29_s27, %s200_s8  ;;  %p206_p13 = scmp.lt.s32.totalorder %s200_s8, %s200_s8 }
  0x1d   :  { %p207_p0 = por %p206_p13, %p205_p12 }
  0x1f   :  { %p208_p1 = pnand %p207_p0, %p201_p11 }
  0x21   :  { %211 = shalt.err (!%p208_p1)
}
  0x22   :  { %34 = dma.hbm_to_vmem [thread:$0]  %s316_s1, 128, %s29_s27, [#allocation6], %s241_s22, %s241_s22, %s242_s23  }
  0x23   :  { %234 = dma.done.wait [#allocation3], 128  }
  0x24   :  { %235 = vsyncadd [#allocation3], 4294967168 }
  0x25   :  { %236 = dma.done.wait [#allocation6], 128  }
  0x26   :  { %237 = vsyncadd [#allocation6], 4294967168  ;;  %v244_v0 = vmov 0.0   ;;  %vm245_vm0 = vmmov 0   ;;  %vm69_vm1 = vcmask 1045504   ;;  %v167_v3 = vld [vmem:[#allocation2] sm:$0xff]  }
  0x27   :  { %153 = vmatprep.subr.bf16.mxu0 %v244_v0  ;;  %155 = vmatprep.mubr.msk.bf16.mxu0 %vm245_vm0, %v244_v0  ;;  %v166_v1 = vld [vmem:[#allocation5] sm:$0x3f]   ;;  %vm65_vm2 = vcmask 97280   ;;  %v143_v4 = vld [vmem:[%s317_s2] ss:$0 sm:$0xff]  ;;  %vm122_vm3 = vcmask 519168  }
  0x28   :  { %v71_v2 = vsel %vm69_vm1, %v166_v1, 0  ;;  %s246_s1 = smov [#allocation7]  }
  0x29   :  { %154 = vmatpush3.bf16.msra.mxu0 %v71_v2  ;;  %s130_s12 = sshll.u32 %s246_s1, 4  ;;  %s131_s12 = int_to_ptr.vmem [resolvable:$true] %s130_s12 }
  0x2a   :  { %s212_s13 = scalar_lea.vmem %s131_s12, 128  ;;  %p217_p3 = scmp.lt.s32.totalorder %s131_s12, %s131_s12 }
  0x2b   :  { %p213_p2 = scmp.ne.s32.totalorder %s131_s12, %s212_s13  ;;  %p218_p4 = scmp.lt.s32.totalorder %s212_s13, %s212_s13 }
  0x2c   :  { %156 = vmatmul.mubr.msk.bf16.vlgmr.msra.gmra.mrb[0].mxu0 %vm65_vm2, %v167_v3 }
  0x2d   :  { %p219_p5 = por %p218_p4, %p217_p3 }
  0x2f   :  { %p220_p6 = pnand %p219_p5, %p213_p2 }
  0xff   :  { %v107_v5 = vpop.f32.mrb[0].mxu0 }
 0x100   :  { %v108_v6 = vadd.f32 %v143_v4, %v107_v5  ;;  %v157_v7 = vpop.f32.mrb[1].mxu0 }
 0x101   :  { %v110_v8 = vpop.f32.mrb[2].mxu0 }
 0x102   :  { %v149_v9 = vpack.c.bf16 %v108_v6, %v108_v6  ;;  %v111_v10 = vadd.f32 %v143_v4, %v110_v8  ;;  %v158_v11 = vpop.f32.mrb[3].mxu0 }
 0x104   :  { %v150_v12 = vpack.c.bf16 %v111_v10, %v111_v10  ;;  %123 = vst.msk [vmem:[#allocation7] sm:$0xf] %vm122_vm3, %v149_v9 }
 0x106   :  { %124 = vst.msk [vmem:[#allocation7 + $0x4] sm:$0xf] %vm122_vm3, %v150_v12 }
 0x107   :  { %223 = shalt.err (!%p220_p6)
}
 0x108   :  { %s224_s15 = scalar_lea.hbm %s318_s3, 128 }
 0x109   :  { %p225_p7 = scmp.ne.s32.totalorder %s318_s3, %s224_s15  ;;  %p228_p8 = scmp.lt.u32.totalorder %s224_s15, %s318_s3 }
 0x10b   :  { %p230_p9 = pnand %p228_p8, %p225_p7 }
 0x10d   :  { %233 = shalt.err (!%p230_p9)
}
 0x10e   :  { %136 = dma.vmem_to_hbm [thread:$0]  %s131_s12, 128, %s318_s3, [#allocation4], %s241_s22, %s241_s22, %s242_s23  }
 0x10f   :  { %238 = dma.done.wait [#allocation4], 128  }
 0x110   :  { %239 = vsyncadd [#allocation4], 4294967168 }
 0x111   :  { %140 = vsyncpa [#allocation3], 1 }
 0x112   :  { %141 = vsyncpa [#allocation6], 1 }
 0x113   :  { %142 = vsyncpa [#allocation4], 1 }

</bundles_post_ra>
